<compile_context>
chip_gen: v6e
topology: v6e:2x2x1
jax: 0.10.0
libtpu: 0.0.40
codegen_flags: <defaults>
</compile_context>

<pallas_src>
from dataclasses import dataclass
from typing import Optional

import jax
import jax.numpy as jnp
from jax.experimental import pallas as pl
from jax.experimental.pallas import tpu as pltpu


def _round_up(x, m):
    return ((x + m - 1) // m) * m


# Explicit scoped-VMEM limit: comfortably under v7x's 64 MiB physical VMEM,
# well under v5e/v6e's 128 MiB, and above v5e's 16 MiB default scoped limit.
_VMEM_LIMIT_BYTES = 48 * 1024 * 1024


def _select_tm(rows, H, Lp, L, x_itemsize):
    """Pick the largest row tile that fits the double-buffered pipeline in the
    VMEM budget, capped at 512, and guarantee >= 2 grid steps when rows > 8 so
    v7x megacore can shard the 'parallel' axis across both TensorCores."""
    budget = int(_VMEM_LIMIT_BYTES * 0.6)
    fixed = 2 * H * Lp * 2 + 4 * Lp * 4                    # weight + bias buffers
    per_row = (2 * H * x_itemsize     # x tile (native dtype), double buffered
               + 2 * L * 4            # f32 logits out, double buffered
               + 2 * 8                # labels + mask, double buffered
               + 4 * Lp * 4)          # in-kernel f32 temporaries (logits, z, exp)
    tm = max((budget - fixed) // per_row, 8)
    tm = max(8, min(512, (tm // 8) * 8))
    if rows > 8:                       # ensure nt >= 2 (keep both v7x TCs busy)
        tm = min(tm, _round_up(-(-rows // 2), 8))
    return int(tm)


def _prep_classifier_params(weight, bias):
    """Transpose + bf16-cast + lane-pad the classifier once (cached in module)."""
    L, H = weight.shape
    Lp = max(_round_up(L, 128), 128)
    wt = weight.T.astype(jnp.bfloat16)                 # [H, L] bf16
    bt = bias.astype(jnp.float32)
    if Lp != L:
        wt = jnp.pad(wt, ((0, 0), (0, Lp - L)))
        bt = jnp.concatenate([bt, jnp.full((Lp - L,), -1e30, jnp.float32)])
    return wt, bt.reshape(1, Lp)


# ----------------------------------------------------------------------------
# Pallas kernels
# ----------------------------------------------------------------------------
def _classifier_loss_kernel(x_ref, w_ref, b_ref, lab_ref, msk_ref,
                            logits_ref, losspart_ref, cntpart_ref):
    # Cast f32 activations to bf16 on the VPU right before the MXU; the cast
    # is hidden under the x DMA (no host-side cast pass).
    x = x_ref[...].astype(jnp.bfloat16)                # [TM, H]
    w = w_ref[...]                                     # [H, Lp] bf16
    b = b_ref[...]                                     # [1, Lp] f32

    logits = jnp.dot(x, w, preferred_element_type=jnp.float32) + b   # [TM, Lp]

    # Store only the real L columns (unpadded output buffer -> minimal HBM
    # write bytes; masked vst for L < 128 is fine since we're HBM-read-bound).
    L = logits_ref.shape[-1]
    logits_ref[...] = logits[:, :L].astype(logits_ref.dtype)

    labels = lab_ref[...]                              # [TM, 1] int32
    mask = msk_ref[...]                                # [TM, 1] f32 (0/1)

    # Numerically stable masked cross-entropy over the lane-padded label axis.
    # Padded lanes carry a -1e30 bias so exp(z_pad) == 0 exactly and the
    # softmax over the real labels is identical to the un-padded one.
    m = jnp.max(logits, axis=-1, keepdims=True)
    z = logits - m
    lse = jnp.log(jnp.sum(jnp.exp(z), axis=-1, keepdims=True))

    tm, lp = logits.shape
    lane = jax.lax.broadcasted_iota(jnp.int32, (tm, lp), 1)
    # Trimmed epilogue: pick z at the label lane, tok_loss = lse - z_label
    # (no full [tm, Lp] logp / picked temporaries).
    picked_z = jnp.sum(jnp.where(labels == lane, z, 0.0), axis=-1, keepdims=True)
    tok_loss = lse - picked_z                          # [TM, 1]

    # Masked rows (incl. garbage ragged-tail rows of the unpadded x stream)
    # contribute exactly 0; jnp.where discards any NaN/Inf they produce.
    # NOTE: removing this where or changing tail handling breaks correctness.
    tok_loss = jnp.where(mask > 0.5, tok_loss, 0.0)

    # Per-tile partial sums -> no resident accumulator, grid stays parallel.
    losspart_ref[...] = jnp.sum(tok_loss).reshape(1, 1, 1)
    cntpart_ref[...] = jnp.sum(mask).reshape(1, 1, 1)


def _classifier_logits_kernel(x_ref, w_ref, b_ref, logits_ref):
    x = x_ref[...].astype(jnp.bfloat16)
    logits = jnp.dot(x, w_ref[...], preferred_element_type=jnp.float32) + b_ref[...]
    L = logits_ref.shape[-1]
    logits_ref[...] = logits[:, :L].astype(logits_ref.dtype)


# ----------------------------------------------------------------------------
# Wrappers around pallas_call
# ----------------------------------------------------------------------------
def classifier_logits_and_loss(x, labels, mask, wt, bt, num_labels):
    """x: [B,S,H] (native dtype), labels/mask: [B,S], wt: [H,Lp] bf16,
    bt: [1,Lp] f32.  Returns (logits [B,S,L] f32, masked mean CE loss)."""
    B, S, H = x.shape
    L = num_labels
    Lp = wt.shape[1]
    rows = B * S

    x_flat = x.reshape(rows, H)                        # NOT padded, NOT cast
    tm = _select_tm(rows, H, Lp, L, x_flat.dtype.itemsize)
    nt = -(-rows // tm)
    rows_pad = nt * tm

    lab = labels.reshape(rows, 1).astype(jnp.int32)
    msk = mask.reshape(rows, 1).astype(jnp.float32)
    if rows_pad != rows:
        # Only the tiny labels/mask arrays are row-padded (mask=0 on pads);
        # the ragged x tail tile relies on the mask/where guard above.
        lab = jnp.pad(lab, ((0, rows_pad - rows), (0, 0)))
        msk = jnp.pad(msk, ((0, rows_pad - rows), (0, 0)))

    cost = pl.CostEstimate(
        flops=2 * rows * H * Lp,
        transcendentals=rows * Lp,
        bytes_accessed=(rows * H * x_flat.dtype.itemsize + rows * L * 4
                        + H * Lp * 2 + rows * 8),
    )

    logits_flat, loss_parts, cnt_parts = pl.pallas_call(
        _classifier_loss_kernel,
        out_shape=(
            jax.ShapeDtypeStruct((rows, L), jnp.float32),
            jax.ShapeDtypeStruct((nt, 1, 1), jnp.float32),
            jax.ShapeDtypeStruct((nt, 1, 1), jnp.float32),
        ),
        grid_spec=pltpu.PrefetchScalarGridSpec(
            num_scalar_prefetch=0,
            grid=(nt,),
            in_specs=[
                pl.BlockSpec((tm, H), lambda i: (i, 0)),   # x rows (streamed)
                pl.BlockSpec((H, Lp), lambda i: (0, 0)),   # weight (resident)
                pl.BlockSpec((1, Lp), lambda i: (0, 0)),   # bias   (resident)
                pl.BlockSpec((tm, 1), lambda i: (i, 0)),   # labels
                pl.BlockSpec((tm, 1), lambda i: (i, 0)),   # mask
            ],
            out_specs=(
                pl.BlockSpec((tm, L), lambda i: (i, 0)),       # logits (unpadded)
                pl.BlockSpec((1, 1, 1), lambda i: (i, 0, 0)),  # loss partials
                pl.BlockSpec((1, 1, 1), lambda i: (i, 0, 0)),  # count partials
            ),
        ),
        compiler_params=pltpu.CompilerParams(
            dimension_semantics=("parallel",),
            vmem_limit_bytes=_VMEM_LIMIT_BYTES),
        cost_estimate=cost,
    )(x_flat, wt, bt, lab, msk)

    # Tiny host-side reduction of the per-tile partials.
    loss = jnp.sum(loss_parts) / jnp.maximum(jnp.sum(cnt_parts), 1.0)
    logits = logits_flat.reshape(B, S, L)
    return logits, loss


def classifier_logits(x, wt, bt, num_labels):
    """Inference path: logits only, no CE epilogue / partial outputs."""
    B, S, H = x.shape
    L = num_labels
    Lp = wt.shape[1]
    rows = B * S

    x_flat = x.reshape(rows, H)
    tm = _select_tm(rows, H, Lp, L, x_flat.dtype.itemsize)
    nt = -(-rows // tm)

    cost = pl.CostEstimate(
        flops=2 * rows * H * Lp,
        transcendentals=0,
        bytes_accessed=rows * H * x_flat.dtype.itemsize + rows * L * 4 + H * Lp * 2,
    )

    logits_flat = pl.pallas_call(
        _classifier_logits_kernel,
        out_shape=jax.ShapeDtypeStruct((rows, L), jnp.float32),
        grid_spec=pltpu.PrefetchScalarGridSpec(
            num_scalar_prefetch=0,
            grid=(nt,),
            in_specs=[
                pl.BlockSpec((tm, H), lambda i: (i, 0)),
                pl.BlockSpec((H, Lp), lambda i: (0, 0)),
                pl.BlockSpec((1, Lp), lambda i: (0, 0)),
            ],
            out_specs=pl.BlockSpec((tm, L), lambda i: (i, 0)),
        ),
        compiler_params=pltpu.CompilerParams(
            dimension_semantics=("parallel",),
            vmem_limit_bytes=_VMEM_LIMIT_BYTES),
        cost_estimate=cost,
    )(x_flat, wt, bt)
    return logits_flat.reshape(B, S, L)


# ----------------------------------------------------------------------------
# Module wrapper mirroring the PyTorch forward glue
# ----------------------------------------------------------------------------
@dataclass
class TokenClassifierResult:
    loss: Optional[jnp.ndarray]
    logits: jnp.ndarray
    decoded: Optional[list]
    labels: Optional[jnp.ndarray]


class RelativeTransformerLinearClassifier:
    def __init__(self, input_size, num_labels, key,
                 use_cls=False, use_sep=False,
                 disable_relative_transformer=True, use_crf=False):
        if not disable_relative_transformer:
            # TODO(synk): RelativeTransformer source not provided; only the
            # disable_relative_transformer=True path is implemented.
            raise NotImplementedError("RelativeTransformer path not available")
        if use_crf:
            # TODO(synk): CRF source not provided; only use_crf=False path.
            raise NotImplementedError("CRF path not available")
        self.use_cls = use_cls
        self.use_sep = use_sep
        self.num_labels = num_labels
        # nn.Linear default init: U(-1/sqrt(fan_in), 1/sqrt(fan_in))
        kw, kb = jax.random.split(key)
        bound = 1.0 / (input_size ** 0.5)
        self.weight = jax.random.uniform(
            kw, (num_labels, input_size), jnp.float32, -bound, bound)
        self.bias = jax.random.uniform(
            kb, (num_labels,), jnp.float32, -bound, bound)
        # Cache kernel-ready (transposed / bf16 / lane-padded) parameters so
        # no per-forward transpose+pad+cast pass is needed.
        self._wt, self._bt = _prep_classifier_params(self.weight, self.bias)

    def forward(self, input, attention_mask=None, word_index=None,
                word_attention_mask=None, labels=None, is_processed=False):
        if not is_processed:
            if not self.use_cls:
                input = input[:, 1:, :]
            if not self.use_sep:
                input = input[:, :-1, :]
            if word_attention_mask is None and attention_mask is not None:
                assert word_index is None
                bias_off = int(not self.use_cls) + int(not self.use_sep)
                word_attention_mask = attention_mask[:, bias_off:] == 1
            if word_index is not None:
                idx = word_index[..., None]
                idx = jnp.broadcast_to(idx, idx.shape[:2] + (input.shape[-1],))
                input = jnp.take_along_axis(input, idx, axis=1)

        # relative_transformer is None -> sequence_output = input
        sequence_output = input

        # Note: CrossEntropyLoss's ignore_index=-100 is handled here only via
        # word_attention_mask (a -100 label at an unmasked position would
        # contribute 0 loss but still count in the denominator).  Labels must
        # lie in [0, num_labels) at unmasked positions.
        if word_attention_mask is None:
            mask = jnp.ones(sequence_output.shape[:2], dtype=jnp.bool_)
        else:
            mask = word_attention_mask

        if labels is not None:
            logits, loss = classifier_logits_and_loss(
                sequence_output, labels, mask, self._wt, self._bt,
                self.num_labels)
        else:
            logits = classifier_logits(
                sequence_output, self._wt, self._bt, self.num_labels)
            loss = None

        return TokenClassifierResult(loss=loss, logits=logits,
                                     decoded=None, labels=labels)


# ----------------------------------------------------------------------------
# Demo / correctness check
# ----------------------------------------------------------------------------
if __name__ == "__main__":
    key = jax.random.PRNGKey(0)
    B, S_in, H, L = 2, 10, 32, 8          # seq includes CLS + SEP tokens
    k1, k2, k3 = jax.random.split(key, 3)

    x = jax.random.normal(k1, (B, S_in, H), jnp.float32)
    attention_mask = jnp.array(
        [[1] * 10,
         [1] * 7 + [0] * 3], dtype=jnp.int32)          # [B, S_in]
    labels = jax.random.randint(k2, (B, S_in - 2), 0, L, dtype=jnp.int32)

    model = RelativeTransformerLinearClassifier(H, L, k3)

    # Training-style path (labels provided): fused logits + masked CE loss.
    result = model.forward(x, attention_mask=attention_mask, labels=labels)
    jax.block_until_ready((result.loss, result.logits))

    # Inference-style path (labels=None): logits-only kernel.
    result_inf = model.forward(x, attention_mask=attention_mask)
    jax.block_until_ready(result_inf.logits)

    # Pure-JAX reference (same bf16 matmul precision as the kernel).
    xw = x[:, 1:, :][:, :-1, :]
    mask = attention_mask[:, 2:] == 1
    S = S_in - 2
    ref_logits = jnp.dot(
        xw.astype(jnp.bfloat16).reshape(B * S, H),
        model.weight.T.astype(jnp.bfloat16),
        preferred_element_type=jnp.float32).reshape(B, S, L) + model.bias
    logp = jax.nn.log_softmax(ref_logits, axis=-1)
    tok = -jnp.take_along_axis(logp, labels[..., None], axis=-1)[..., 0]
    ref_loss = jnp.sum(tok * mask) / jnp.sum(mask)

    assert result.logits.shape == (B, S, L)
    assert result_inf.logits.shape == (B, S, L)
    assert result_inf.loss is None
    assert jnp.allclose(result.logits, ref_logits, atol=2e-2, rtol=2e-2), (
        jnp.max(jnp.abs(result.logits - ref_logits)))
    assert jnp.allclose(result_inf.logits, ref_logits, atol=2e-2, rtol=2e-2), (
        jnp.max(jnp.abs(result_inf.logits - ref_logits)))
    assert jnp.allclose(result.loss, ref_loss, atol=2e-2, rtol=2e-2), (
        result.loss, ref_loss)
    print("KERNEL_OK")
</pallas_src>

<mosaic_0001>
module attributes {stable_mosaic.version = 11 : i64} {
  func.func @_classifier_loss_kernel(%arg0: i32, %arg1: memref<8x32xf32, #tpu.memory_space<vmem>>, %arg2: memref<32x128xbf16, #tpu.memory_space<vmem>>, %arg3: memref<1x128xf32, #tpu.memory_space<vmem>>, %arg4: memref<8x1xi32, #tpu.memory_space<vmem>>, %arg5: memref<8x1xf32, #tpu.memory_space<vmem>>, %arg6: memref<8x8xf32, #tpu.memory_space<vmem>>, %arg7: memref<1x1x1xf32, #tpu.memory_space<vmem>>, %arg8: memref<1x1x1xf32, #tpu.memory_space<vmem>>) attributes {dimension_semantics = [#tpu.dimension_semantics<parallel>], iteration_bounds = array<i64: 2>, scalar_prefetch = 0 : i64, scratch_operands = 0 : i64, tpu.core_type = #tpu.core_type<tc>, window_params = [{transform_indices = @transform_0, window_bounds = array<i64: 8, 32>}, {pipeline_mode = #tpu.pipeline_mode<synchronous>, transform_indices = @transform_1, window_bounds = array<i64: 32, 128>}, {pipeline_mode = #tpu.pipeline_mode<synchronous>, transform_indices = @transform_2, window_bounds = array<i64: 1, 128>}, {transform_indices = @transform_3, window_bounds = array<i64: 8, 1>}, {transform_indices = @transform_4, window_bounds = array<i64: 8, 1>}, {transform_indices = @transform_5, window_bounds = array<i64: 8, 8>}, {transform_indices = @transform_6, window_bounds = array<i64: 1, 1, 1>}, {transform_indices = @transform_7, window_bounds = array<i64: 1, 1, 1>}]} {
    %c0 = arith.constant 0 : index
    %c0_0 = arith.constant 0 : index
    %0 = vector.load %arg1[%c0, %c0_0] : memref<8x32xf32, #tpu.memory_space<vmem>>, vector<8x32xf32>
    %1 = arith.truncf %0 : vector<8x32xf32> to vector<8x32xbf16>
    %c0_1 = arith.constant 0 : index
    %c0_2 = arith.constant 0 : index
    %2 = vector.load %arg2[%c0_1, %c0_2] : memref<32x128xbf16, #tpu.memory_space<vmem>>, vector<32x128xbf16>
    %c0_3 = arith.constant 0 : index
    %c0_4 = arith.constant 0 : index
    %3 = vector.load %arg3[%c0_3, %c0_4] : memref<1x128xf32, #tpu.memory_space<vmem>>, vector<1x128xf32>
    %cst = arith.constant dense<0.000000e+00> : vector<8x128xf32>
    %4 = tpu.matmul %1, %2, %cst {dimension_numbers = #tpu.dot_dimension_numbers<[1], [0], [0], [1], [0, 0, 1, 1], [], []>} : vector<8x32xbf16>, vector<32x128xbf16>, vector<8x128xf32> -> vector<8x128xf32>
    %5 = vector.broadcast %3 : vector<1x128xf32> to vector<8x128xf32>
    %6 = arith.addf %4, %5 : vector<8x128xf32>
    %7 = vector.extract_strided_slice %6 {offsets = [0, 0], sizes = [8, 8], strides = [1, 1]} : vector<8x128xf32> to vector<8x8xf32>
    %c0_5 = arith.constant 0 : index
    %c0_6 = arith.constant 0 : index
    %8 = vector.load %arg6[%c0_5, %c0_6] : memref<8x8xf32, #tpu.memory_space<vmem>>, vector<8x8xf32>
    tpu.vector_store %arg6[%c0_5, %c0_6], %7 {strides = array<i32>} : memref<8x8xf32, #tpu.memory_space<vmem>>, vector<8x8xf32>,
    %c0_7 = arith.constant 0 : index
    %c0_8 = arith.constant 0 : index
    %9 = vector.load %arg4[%c0_7, %c0_8] : memref<8x1xi32, #tpu.memory_space<vmem>>, vector<8x1xi32>
    %c0_9 = arith.constant 0 : index
    %c0_10 = arith.constant 0 : index
    %10 = vector.load %arg5[%c0_9, %c0_10] : memref<8x1xf32, #tpu.memory_space<vmem>>, vector<8x1xf32>
    %cst_11 = arith.constant dense<0xFF800000> : vector<8xf32>
    %11 = vector.multi_reduction <maximumf>, %6, %cst_11 [1] : vector<8x128xf32> to vector<8xf32>
    %12 = vector.shape_cast %11 : vector<8xf32> to vector<8x1xf32>
    %13 = vector.broadcast %12 : vector<8x1xf32> to vector<8x128xf32>
    %14 = arith.subf %6, %13 : vector<8x128xf32>
    %15 = math.exp %14 : vector<8x128xf32>
    %cst_12 = arith.constant dense<0.000000e+00> : vector<8xf32>
    %16 = vector.multi_reduction <add>, %15, %cst_12 [1] : vector<8x128xf32> to vector<8xf32>
    %17 = vector.shape_cast %16 : vector<8xf32> to vector<8x1xf32>
    %18 = math.log %17 : vector<8x1xf32>
    %19 = tpu.iota {dimensions = array<i32: 1>} : vector<8x128xi32>
    %20 = vector.broadcast %9 : vector<8x1xi32> to vector<8x128xi32>
    %21 = arith.cmpi eq, %20, %19 : vector<8x128xi32>
    %cst_13 = arith.constant 0.000000e+00 : f32
    %22 = vector.broadcast %cst_13 : f32 to vector<8x128xf32>
    %23 = arith.select %21, %14, %22 : vector<8x128xi1>, vector<8x128xf32>
    %cst_14 = arith.constant dense<0.000000e+00> : vector<8xf32>
    %24 = vector.multi_reduction <add>, %23, %cst_14 [1] : vector<8x128xf32> to vector<8xf32>
    %25 = vector.shape_cast %24 : vector<8xf32> to vector<8x1xf32>
    %26 = arith.subf %18, %25 : vector<8x1xf32>
    %cst_15 = arith.constant 5.000000e-01 : f32
    %27 = vector.broadcast %cst_15 : f32 to vector<8x1xf32>
    %28 = arith.cmpf ogt, %10, %27 : vector<8x1xf32>
    %cst_16 = arith.constant 0.000000e+00 : f32
    %29 = vector.broadcast %cst_16 : f32 to vector<8x1xf32>
    %30 = arith.select %28, %26, %29 : vector<8x1xi1>, vector<8x1xf32>
    %31 = vector.shape_cast %30 : vector<8x1xf32> to vector<1x8x1xf32>
    %cst_17 = arith.constant dense<0.000000e+00> : vector<1xf32>
    %32 = vector.multi_reduction <add>, %31, %cst_17 [1, 2] : vector<1x8x1xf32> to vector<1xf32>
    %33 = vector.shape_cast %32 : vector<1xf32> to vector<1x1x1xf32>
    %34 = vector.extract %33[0, 0, 0] : f32 from vector<1x1x1xf32>
    %35 = vector.broadcast %34 : f32 to vector<1x1x1xf32>
    %c0_18 = arith.constant 0 : index
    %c0_19 = arith.constant 0 : index
    %c0_20 = arith.constant 0 : index
    %36 = vector.load %arg7[%c0_18, %c0_19, %c0_20] : memref<1x1x1xf32, #tpu.memory_space<vmem>>, vector<1x1x1xf32>
    tpu.vector_store %arg7[%c0_18, %c0_19, %c0_20], %35 {strides = array<i32>} : memref<1x1x1xf32, #tpu.memory_space<vmem>>, vector<1x1x1xf32>,
    %37 = vector.shape_cast %10 : vector<8x1xf32> to vector<1x8x1xf32>
    %cst_21 = arith.constant dense<0.000000e+00> : vector<1xf32>
    %38 = vector.multi_reduction <add>, %37, %cst_21 [1, 2] : vector<1x8x1xf32> to vector<1xf32>
    %39 = vector.shape_cast %38 : vector<1xf32> to vector<1x1x1xf32>
    %40 = vector.extract %39[0, 0, 0] : f32 from vector<1x1x1xf32>
    %41 = vector.broadcast %40 : f32 to vector<1x1x1xf32>
    %c0_22 = arith.constant 0 : index
    %c0_23 = arith.constant 0 : index
    %c0_24 = arith.constant 0 : index
    %42 = vector.load %arg8[%c0_22, %c0_23, %c0_24] : memref<1x1x1xf32, #tpu.memory_space<vmem>>, vector<1x1x1xf32>
    tpu.vector_store %arg8[%c0_22, %c0_23, %c0_24], %41 {strides = array<i32>} : memref<1x1x1xf32, #tpu.memory_space<vmem>>, vector<1x1x1xf32>,
    return
  }
  func.func @transform_0(%arg0: i32) -> (i32, i32) {
    %c0_i32 = arith.constant 0 : i32
    %c0_i32_0 = arith.constant 0 : i32
    return %arg0, %c0_i32 : i32, i32
  }
  func.func @transform_1(%arg0: i32) -> (i32, i32) {
    %c0_i32 = arith.constant 0 : i32
    %c0_i32_0 = arith.constant 0 : i32
    %c0_i32_1 = arith.constant 0 : i32
    return %c0_i32, %c0_i32_0 : i32, i32
  }
  func.func @transform_2(%arg0: i32) -> (i32, i32) {
    %c0_i32 = arith.constant 0 : i32
    %c0_i32_0 = arith.constant 0 : i32
    %c0_i32_1 = arith.constant 0 : i32
    return %c0_i32, %c0_i32_0 : i32, i32
  }
  func.func @transform_3(%arg0: i32) -> (i32, i32) {
    %c0_i32 = arith.constant 0 : i32
    %c0_i32_0 = arith.constant 0 : i32
    return %arg0, %c0_i32 : i32, i32
  }
  func.func @transform_4(%arg0: i32) -> (i32, i32) {
    %c0_i32 = arith.constant 0 : i32
    %c0_i32_0 = arith.constant 0 : i32
    return %arg0, %c0_i32 : i32, i32
  }
  func.func @transform_5(%arg0: i32) -> (i32, i32) {
    %c0_i32 = arith.constant 0 : i32
    %c0_i32_0 = arith.constant 0 : i32
    return %arg0, %c0_i32 : i32, i32
  }
  func.func @transform_6(%arg0: i32) -> (i32, i32, i32) {
    %c0_i32 = arith.constant 0 : i32
    %c0_i32_0 = arith.constant 0 : i32
    %c0_i32_1 = arith.constant 0 : i32
    return %arg0, %c0_i32, %c0_i32_0 : i32, i32, i32
  }
  func.func @transform_7(%arg0: i32) -> (i32, i32, i32) {
    %c0_i32 = arith.constant 0 : i32
    %c0_i32_0 = arith.constant 0 : i32
    %c0_i32_1 = arith.constant 0 : i32
    return %arg0, %c0_i32, %c0_i32_0 : i32, i32, i32
  }
}

</mosaic_0001>

<bundles_post_ra>
// kernel: tpu_custom_call.1
= control target key start
LH: loop header
LB: loop body
LE: loop exit
PB: predicated region body
PF: predicated region fallthrough
CT: control target
= control target key end

     0   :  { %s672_s24 = smov 0   ;;  %s721_s0 = inlined_call_operand.vmem [shape: f32[16,32], index: 0, kind: input, shape index: {}]   ;;  %s722_s1 = inlined_call_operand.vmem [shape: bf16[32,128], index: 1, kind: input, shape index: {}]   ;;  %s723_s2 = inlined_call_operand.vmem [shape: f32[1,128], index: 2, kind: input, shape index: {}]   ;;  %s724_s3 = inlined_call_operand.vmem [shape: s32[16,1], index: 3, kind: input, shape index: {}]   ;;  %s725_s4 = inlined_call_operand.vmem [shape: f32[16,1], index: 4, kind: input, shape index: {}]   ;;  %s726_s5 = inlined_call_operand.vmem [shape: f32[16,8], index: 5, kind: output, shape index: {0}]   ;;  %s727_s6 = inlined_call_operand.vmem [shape: f32[2,1,1], index: 6, kind: output, shape index: {1}]   ;;  %s728_s7 = inlined_call_operand.vmem [shape: f32[2,1,1], index: 7, kind: output, shape index: {2}]  }
   0x1 LB: > { %s573_s25 = sadd.s32 4294967295, %s627_s24   ;;  %p577_p0 = scmp.ge.s32.totalorder %s627_s24, 1  ;;  %s627_s24 = sphi %s672_s24, %s18_s24  }
   0x2   : > { %p259_p1 = scmp.lt.s32.totalorder %s627_s24, 3 }
   0x4   : > { %p260_p2 = pnand %p577_p0, %p259_p1 }
   0x5   : > { %p303_p3 = scmp.lt.s32.totalorder (!%p260_p2), %s573_s25, 1 }
   0x6   : > { %263 = sbr.rel (%p260_p2) target bundleno = 735 (0x2df), region = 40 }
   0xb   : > { %v615_v0 = vld [vmem:[%s722_s1 + $0x8] sm:$0xff]   ;;  %v629_v1 = vmov 0.0   ;;  %v616_v2 = vld [vmem:[%s722_s1] sm:$0xff]   ;;  %vm630_vm0 = vmmov 0   ;;  %s730_s25 = smov (!%p303_p3, %s573_s25), 1  ;;  %vm351_vm1 = vcmask 261120   ;;  %v408_v16 = vlaneseq }
   0xc   : > { %591 = vmatprep.subr.bf16.mxu0 %v629_v1  ;;  %595 = vmatprep.mubr.msk.bf16.mxu0 %vm630_vm0, %v629_v1  ;;  %s689_s30 = sshll.u32 %s730_s25, 3  ;;  %v631_v5 = vmov 0   ;;  %v582_v6 = vld [vmem:[%s723_s2] ss:$0 sm:$0xff]  ;;  %vm395_vm2 = vcmask 64512   ;;  %vm420_vm5 = vcmask 7168   ;;  %s321_s26 = scalar_lea.vmem %s727_s6, %s730_s25 }
   0xd   : > { %592 = vmatpush3.bf16.msra.mxu0 %v615_v0  ;;  %s306_s10 = scalar_lea.vmem %s721_s0, %s689_s30  ;;  %614 = vset.pattern.permute.xlu0 %v631_v5  ;;  %s318_s15 = scalar_lea.vmem %s726_s5, %s689_s30  ;;  %v409_v17 = vand.u32 127, %v408_v16  ;;  %vm432_vm6 = vcmask 0  }
   0xe   : > { %593 = vmatprep.subr.bf16.mxu0 %v629_v1  ;;  %v326_v3 = vld [vmem:[%s306_s10] sm:$0xff]  ;;  %s310_s18 = scalar_lea.vmem %s724_s3, %s689_s30  ;;  %s314_s21 = scalar_lea.vmem %s725_s4, %s689_s30 }
   0xf   : > { %v327_v4 = vpack.c.bf16 %v326_v3, %v326_v3  ;;  %v397_v12 = vld [vmem:[%s310_s18] sm:$0xff]  ;;  %s324_s30 = scalar_lea.vmem %s728_s7, %s730_s25 }
  0x10   : > { %v398_v22 = vld [vmem:[%s314_s21] sm:$0xff] }
  0x11   : > { %594 = vmatpush3.bf16.msra.mxu0 %v616_v2  ;;  %vm418_vm4 = vcmp.gt.f32.partialorder %v398_v22, 0.5  ;;  %v434_v29 = vsel %vm420_vm5, %v398_v22, 0.0 }
  0x14   : > { %596 = vmatmul.mubr.msk.bf16.vlgmr.msra.gmra.mxu0 %vm351_vm1, %v327_v4 }
  0xd4   : > { %v389_v7 = vpop.f32.mrf.mxu0 }
  0xd5   : > { %v390_v8 = vadd.f32 %v582_v6, %v389_v7 }
  0xd6   : > { %v597_v9 = vpop.f32.mrf.mxu0 }
  0xd7   : > { %396 = vst.msk [vmem:[%s318_s15] sm:$0xff] %vm395_vm2, %v390_v8  ;;  %399 = vmax.xlane.f32.xlu0 %v390_v8 }
  0xd8   : > { %v392_v10 = vpop.f32.mrf.mxu0 }
  0xda   : > { %v598_v11 = vpop.f32.mrf.mxu0 }
  0xed   : > { %411 = vperm.xlu0 %614, %v397_v12  }
 0x160   : > { %v400_v13 = vpop.xlane.xlu0 %399 }
 0x161   : > { %v401_v14 = vsub.f32 %v390_v8, %v400_v13 }
 0x163   : > { %v402_v15 = vmul.f32 1.442695, %v401_v14 }
 0x165   : > { %617 = vpow2.f32 %v402_v15 }
 0x168   : > { %v412_v18 = vpop.permute.xlu0 %411 }
 0x169   : > { %vm413_vm3 = vcmp.eq.s32.totalorder %v412_v18, %v409_v17 }
 0x16a   : > { %v414_v20 = vsel %vm413_vm3, %v401_v14, 0.0 }
 0x172   : > { %v618_v19 = vpop.eup %617 }
 0x173   : > { %404 = vadd.xlane.f32.xlu1 %v618_v19 }
 0x177   : > { %415 = vadd.xlane.f32.xlu1 %v414_v20 }
 0x1fc   : > { %v405_v21 = vpop.xlane.xlu1 %404 }
 0x1fd   : > { %619 = vlog2.f32 %v405_v21 }
 0x200   : > { %v416_v25 = vpop.xlane.xlu1 %415 }
 0x20a   : > { %v620_v23 = vpop.eup %619 }
 0x20b   : > { %v407_v24 = vmul.f32 0.6931472, %v620_v23 }
 0x20d   : > { %v417_v26 = vsub.f32 %v407_v24, %v416_v25 }
 0x20f   : > { %v419_v27 = vsel %vm418_vm4, %v417_v26, 0.0 }
 0x210   : > { %v421_v28 = vsel %vm420_vm5, %v419_v27, 0.0 }
 0x211   : > { %422 = vadd.xlane.f32.xlu1 %v421_v28 }
 0x215   : > { %435 = vadd.xlane.f32.xlu1 %v434_v29 }
 0x29a   : > { %v423_v30 = vpop.xlane.xlu1 %422 }
 0x29b   : > { %v424_v31 = vrot.slane %v423_v30, 4 }
 0x29d   : > { %v425_v32 = vadd.f32 %v424_v31, %v423_v30 }
 0x29e   : > { %v436_v33 = vpop.xlane.xlu1 %435 }
 0x29f   : > { %v426_v34 = vrot.slane %v425_v32, 2  ;;  %v437_v35 = vrot.slane %v436_v33, 4 }
 0x2a1   : > { %v438_v36 = vadd.f32 %v437_v35, %v436_v33  ;;  %v427_v37 = vadd.f32 %v426_v34, %v425_v32 }
 0x2a3   : > { %v439_v38 = vrot.slane %v438_v36, 2  ;;  %v428_v39 = vrot.slane %v427_v37, 1 }
 0x2a5   : > { %v440_v40 = vadd.f32 %v439_v38, %v438_v36  ;;  %v429_v41 = vadd.f32 %v428_v39, %v427_v37 }
 0x2a7   : > { %599 = vpush %v429_v41  ;;  %v441_v42 = vrot.slane %v440_v40, 1 }
 0x2a9   : > { %v442_v43 = vadd.f32 %v441_v42, %v440_v40 }
 0x2ab   : > { %601 = vpush %v442_v43 }
 0x2d8   : > { %s600_s27 = spop %599 }
 0x2d9   : > { %v431_v44 = vstv %s600_s27 }
 0x2da   : > { %433 = vst.msk [vmem:[%s321_s26] sm:$0x1] %vm432_vm6, %v431_v44 }
 0x2dc   : > { %s602_s8 = spop %601 }
 0x2dd   : > { %v444_v45 = vstv %s602_s8 }
 0x2de   : > { %445 = vst.msk [vmem:[%s324_s30] sm:$0x1] %vm432_vm6, %v444_v45 }
 0x2df PF: > { %s18_s24 = sadd.s32 1, %s627_s24  }
 0x2e0   : > { %p15_p4 = scmp.ge.s32.totalorder %s18_s24, 4  }
 0x2e2   :  { %17 = sbr.rel (!%p15_p4) target bundleno = 1 (0x1), region = 100 }

</bundles_post_ra>
